<compile_context>
chip_gen: v7x
topology: tpu7x:2x2x1
jax: 0.10.0
libtpu: 0.0.40
codegen_flags: <defaults>
</compile_context>

<pallas_src>
import functools

import jax
import jax.numpy as jnp
import numpy as np
from jax.experimental import pallas as pl
from jax.experimental.pallas import tpu as pltpu


def _round_up(x: int, m: int) -> int:
    return ((x + m - 1) // m) * m


def _cdiv(a: int, b: int) -> int:
    return (a + b - 1) // b


def _make_kernel(offsets, total_embed: int):
    num_cat = len(offsets)

    def kernel(numbers_ref, idx_t_ref, w_ref, catw_ref, bias_ref, out_ref):
        nums = numbers_ref[...]                     # (TB, K) f32, natural layout
        idx = idx_t_ref[...]                        # (num_cat, TB) i32
        tb = idx.shape[1]

        # Numeric contribution: (C, K) x (TB, K) contracting on K -> (C, TB).
        # Transposed-RHS dot_general; MXU consumes the natural-layout tile directly.
        logits = jax.lax.dot_general(
            w_ref[...], nums,
            dimension_numbers=(((1,), (1,)), ((), ())),
            preferred_element_type=jnp.float32)

        # Categorical contribution: multi-hot (E, TB) with static per-feature offsets,
        # then a second accumulating MXU dot (C, E) @ (E, TB).
        row = jax.lax.broadcasted_iota(jnp.int32, (total_embed, tb), 0)
        acc = (row == (idx[0:1, :] + offsets[0])).astype(jnp.int32)
        for j in range(1, num_cat):                 # num_cat is a small static constant
            acc = acc + (row == (idx[j:j + 1, :] + offsets[j])).astype(jnp.int32)
        multihot = acc.astype(jnp.float32)          # single int -> f32 cast
        logits = logits + jnp.dot(catw_ref[...], multihot,
                                  preferred_element_type=jnp.float32)

        logits = logits + bias_ref[...]             # (C, 1) broadcast over batch lanes
        logits = jnp.clip(logits, -50.0, 50.0)

        # Softmax over classes (sublane axis 0); batch stays on lanes.
        m = jnp.max(logits, axis=0, keepdims=True)
        e = jnp.exp(logits - m)
        denom = jnp.sum(e, axis=0, keepdims=True)   # (1, TB), denom >= 1
        r = pl.reciprocal(denom, approx=True)       # EUP slot, nearly free
        r = r * (2.0 - denom * r)                   # Newton refinement 1
        r = r * (2.0 - denom * r)                   # Newton refinement 2
        out_ref[...] = e * r

    return kernel


@functools.partial(jax.jit, static_argnames=("embed_sizes",))
def cat_multiclass_forward(numbers, categories, weight, bias, cat_params, *, embed_sizes):
    """CatMulticlass forward.

    numbers:     (B, K) f32
    categories:  (B, num_cat) int
    weight:      (C, K) f32   (torch nn.Linear weight layout)
    bias:        (C,) f32
    cat_params:  (E, C) f32   (stacked embedding tables, E = sum(embed_sizes))
    embed_sizes: static tuple of per-feature cardinalities
    returns:     (B, C) f32 softmax probabilities
    """
    B, K = numbers.shape
    C = bias.shape[0]
    num_cat = len(embed_sizes)
    E = cat_params.shape[0]
    assert categories.shape == (B, num_cat)
    assert int(sum(embed_sizes)) == E

    # Static cumulative offsets (embed_idx of the torch module).
    sizes = np.asarray(embed_sizes, dtype=np.int64)
    offsets = tuple(int(o) for o in (np.cumsum(sizes) - sizes))

    # Batch tile: lane-dense (multiple of 128), large enough to amortize the ~0.35 us
    # per-grid-step pipeline overhead, but keeping >= ~4 grid steps for realistic B
    # so both v7x TensorCores get work.
    tile_b = min(8192, _round_up(max(_cdiv(B, 4), 1), 128))
    # Guardrail for large embedding tables: ~4 copies of (E, tile_b) i32/f32 live per
    # step; keep them under ~12 MiB so the whole step fits v7x's 64 MiB VMEM.
    max_tile_for_e = max(128, (((12 << 20) // max(1, 16 * E)) // 128) * 128)
    tile_b = min(tile_b, max_tile_for_e)
    grid = (_cdiv(B, tile_b),)

    # Layout plumbing (cheap, tiny operands only): transpose categories so each
    # feature is a lane-vector; transpose cat_params to (C, E); bias to (C, 1).
    idx_t = categories.astype(jnp.int32).T          # (num_cat, B)
    catw = cat_params.T                             # (C, E)
    bias_c1 = bias.reshape(C, 1)

    out_t = pl.pallas_call(
        _make_kernel(offsets, E),
        out_shape=jax.ShapeDtypeStruct((C, B), jnp.float32),
        grid=grid,
        in_specs=[
            pl.BlockSpec((tile_b, K), lambda i: (i, 0)),         # numbers, natural layout
            pl.BlockSpec((num_cat, tile_b), lambda i: (0, i)),   # categories (transposed)
            pl.BlockSpec((C, K), lambda i: (0, 0)),              # weight (grid-invariant)
            pl.BlockSpec((C, E), lambda i: (0, 0)),              # cat_params^T (grid-invariant)
            pl.BlockSpec((C, 1), lambda i: (0, 0)),              # bias (grid-invariant)
        ],
        out_specs=pl.BlockSpec((C, tile_b), lambda i: (0, i)),
        compiler_params=pltpu.CompilerParams(
            dimension_semantics=("parallel",),
            vmem_limit_bytes=32 * 1024 * 1024,
        ),
    )(numbers, idx_t, weight, catw, bias_c1)

    return out_t.T                                  # (B, C); no padded columns to slice


if __name__ == "__main__":
    key = jax.random.PRNGKey(0)
    k1, k2, k3, k4 = jax.random.split(key, 4)

    numeric_size = 32                                     # numeric features (K)
    embed_sizes = (4, 5, 7)                               # 3 categorical features
    num_cat = len(embed_sizes)
    total_embed = int(sum(embed_sizes))                   # E = 16
    output_size = 8                                       # classes (C)

    # Deterministic synthetic parameters (module inits them to zero; use small
    # random values to exercise a non-trivial path).
    weight = jax.random.normal(k1, (output_size, numeric_size), jnp.float32) * 0.1
    bias = jax.random.normal(k2, (output_size,), jnp.float32) * 0.1
    cat_params = jax.random.normal(k3, (total_embed, output_size), jnp.float32) * 0.1
    sizes_np = np.asarray(embed_sizes, dtype=np.int64)
    embed_idx = jnp.asarray(np.cumsum(sizes_np) - sizes_np, dtype=jnp.int32)

    for B in (8, 19):   # small batches; 19 exercises the partial-tile path
        kk = jax.random.fold_in(k4, B)
        kn, kc = jax.random.split(kk)
        numbers = jax.random.normal(kn, (B, numeric_size), jnp.float32)
        categories = jnp.stack(
            [jax.random.randint(k, (B,), 0, int(sz))
             for k, sz in zip(jax.random.split(kc, num_cat), embed_sizes)],
            axis=1,
        ).astype(jnp.int32)

        out = cat_multiclass_forward(numbers, categories, weight, bias,
                                     cat_params, embed_sizes=embed_sizes)
        out = jax.block_until_ready(out)

        # Pure-JAX reference for correctness.
        logits = bias[None, :] + numbers @ weight.T
        logits = logits + cat_params[categories + embed_idx[None, :]].sum(axis=1)
        logits = jnp.clip(logits, -50.0, 50.0)
        ref = jax.nn.softmax(logits, axis=1)

        np.testing.assert_allclose(np.asarray(out), np.asarray(ref),
                                   rtol=1e-5, atol=1e-5)

    print("KERNEL_OK")
</pallas_src>

<mosaic_0001>
module attributes {stable_mosaic.version = 11 : i64} {
  func.func @kernel(%arg0: i32, %arg1: memref<128x32xf32, #tpu.memory_space<vmem>>, %arg2: memref<3x128xi32, #tpu.memory_space<vmem>>, %arg3: memref<8x32xf32, #tpu.memory_space<vmem>>, %arg4: memref<8x16xf32, #tpu.memory_space<vmem>>, %arg5: memref<8x1xf32, #tpu.memory_space<vmem>>, %arg6: memref<8x128xf32, #tpu.memory_space<vmem>>) attributes {dimension_semantics = [#tpu.dimension_semantics<parallel>], iteration_bounds = array<i64: 1>, scalar_prefetch = 0 : i64, scratch_operands = 0 : i64, tpu.core_type = #tpu.core_type<tc>, window_params = [{transform_indices = @transform_0, window_bounds = array<i64: 128, 32>}, {transform_indices = @transform_1, window_bounds = array<i64: 3, 128>}, {pipeline_mode = #tpu.pipeline_mode<synchronous>, transform_indices = @transform_2, window_bounds = array<i64: 8, 32>}, {pipeline_mode = #tpu.pipeline_mode<synchronous>, transform_indices = @transform_3, window_bounds = array<i64: 8, 16>}, {pipeline_mode = #tpu.pipeline_mode<synchronous>, transform_indices = @transform_4, window_bounds = array<i64: 8, 1>}, {transform_indices = @transform_5, window_bounds = array<i64: 8, 128>}]} {
    %c0 = arith.constant 0 : index
    %c0_0 = arith.constant 0 : index
    %0 = vector.load %arg1[%c0, %c0_0] : memref<128x32xf32, #tpu.memory_space<vmem>>, vector<128x32xf32>
    %c0_1 = arith.constant 0 : index
    %c0_2 = arith.constant 0 : index
    %1 = vector.load %arg2[%c0_1, %c0_2] : memref<3x128xi32, #tpu.memory_space<vmem>>, vector<3x128xi32>
    %c0_3 = arith.constant 0 : index
    %c0_4 = arith.constant 0 : index
    %2 = vector.load %arg3[%c0_3, %c0_4] : memref<8x32xf32, #tpu.memory_space<vmem>>, vector<8x32xf32>
    %cst = arith.constant dense<0.000000e+00> : vector<8x128xf32>
    %3 = tpu.matmul %2, %0, %cst {dimension_numbers = #tpu.dot_dimension_numbers<[1], [1], [0], [0], [0, 0, 1, 0], [], []>} : vector<8x32xf32>, vector<128x32xf32>, vector<8x128xf32> -> vector<8x128xf32>
    %4 = tpu.iota {dimensions = array<i32: 0>} : vector<16x128xi32>
    %5 = vector.extract_strided_slice %1 {offsets = [0, 0], sizes = [1, 128], strides = [1, 1]} : vector<3x128xi32> to vector<1x128xi32>
    %c0_i32 = arith.constant 0 : i32
    %6 = vector.broadcast %c0_i32 : i32 to vector<1x128xi32>
    %7 = arith.addi %5, %6 : vector<1x128xi32>
    %8 = vector.broadcast %7 : vector<1x128xi32> to vector<16x128xi32>
    %9 = arith.cmpi eq, %4, %8 : vector<16x128xi32>
    %10 = arith.extui %9 : vector<16x128xi1> to vector<16x128xi32>
    %11 = vector.extract_strided_slice %1 {offsets = [1, 0], sizes = [1, 128], strides = [1, 1]} : vector<3x128xi32> to vector<1x128xi32>
    %c4_i32 = arith.constant 4 : i32
    %12 = vector.broadcast %c4_i32 : i32 to vector<1x128xi32>
    %13 = arith.addi %11, %12 : vector<1x128xi32>
    %14 = vector.broadcast %13 : vector<1x128xi32> to vector<16x128xi32>
    %15 = arith.cmpi eq, %4, %14 : vector<16x128xi32>
    %16 = arith.extui %15 : vector<16x128xi1> to vector<16x128xi32>
    %17 = arith.addi %10, %16 : vector<16x128xi32>
    %18 = vector.extract_strided_slice %1 {offsets = [2, 0], sizes = [1, 128], strides = [1, 1]} : vector<3x128xi32> to vector<1x128xi32>
    %c9_i32 = arith.constant 9 : i32
    %19 = vector.broadcast %c9_i32 : i32 to vector<1x128xi32>
    %20 = arith.addi %18, %19 : vector<1x128xi32>
    %21 = vector.broadcast %20 : vector<1x128xi32> to vector<16x128xi32>
    %22 = arith.cmpi eq, %4, %21 : vector<16x128xi32>
    %23 = arith.extui %22 : vector<16x128xi1> to vector<16x128xi32>
    %24 = arith.addi %17, %23 : vector<16x128xi32>
    %25 = arith.sitofp %24 : vector<16x128xi32> to vector<16x128xf32>
    %c0_5 = arith.constant 0 : index
    %c0_6 = arith.constant 0 : index
    %26 = vector.load %arg4[%c0_5, %c0_6] : memref<8x16xf32, #tpu.memory_space<vmem>>, vector<8x16xf32>
    %cst_7 = arith.constant dense<0.000000e+00> : vector<8x128xf32>
    %27 = tpu.matmul %26, %25, %cst_7 {dimension_numbers = #tpu.dot_dimension_numbers<[1], [0], [0], [1], [0, 0, 1, 1], [], []>} : vector<8x16xf32>, vector<16x128xf32>, vector<8x128xf32> -> vector<8x128xf32>
    %28 = arith.addf %3, %27 : vector<8x128xf32>
    %c0_8 = arith.constant 0 : index
    %c0_9 = arith.constant 0 : index
    %29 = vector.load %arg5[%c0_8, %c0_9] : memref<8x1xf32, #tpu.memory_space<vmem>>, vector<8x1xf32>
    %30 = vector.broadcast %29 : vector<8x1xf32> to vector<8x128xf32>
    %31 = arith.addf %28, %30 : vector<8x128xf32>
    %cst_10 = arith.constant -5.000000e+01 : f32
    %cst_11 = arith.constant 5.000000e+01 : f32
    %32 = vector.broadcast %cst_10 : f32 to vector<8x128xf32>
    %33 = arith.maximumf %32, %31 : vector<8x128xf32>
    %34 = vector.broadcast %cst_11 : f32 to vector<8x128xf32>
    %35 = arith.minimumf %34, %33 : vector<8x128xf32>
    %cst_12 = arith.constant dense<0xFF800000> : vector<128xf32>
    %36 = vector.multi_reduction <maximumf>, %35, %cst_12 [0] : vector<8x128xf32> to vector<128xf32>
    %37 = vector.shape_cast %36 : vector<128xf32> to vector<1x128xf32>
    %38 = vector.broadcast %37 : vector<1x128xf32> to vector<8x128xf32>
    %39 = arith.subf %35, %38 : vector<8x128xf32>
    %40 = math.exp %39 : vector<8x128xf32>
    %cst_13 = arith.constant dense<0.000000e+00> : vector<128xf32>
    %41 = vector.multi_reduction <add>, %40, %cst_13 [0] : vector<8x128xf32> to vector<128xf32>
    %42 = vector.shape_cast %41 : vector<128xf32> to vector<1x128xf32>
    %43 = tpu.reciprocal %42 {approx = true} : vector<1x128xf32> -> vector<1x128xf32>
    %44 = arith.mulf %42, %43 : vector<1x128xf32>
    %cst_14 = arith.constant 2.000000e+00 : f32
    %45 = vector.broadcast %cst_14 : f32 to vector<1x128xf32>
    %46 = arith.subf %45, %44 : vector<1x128xf32>
    %47 = arith.mulf %43, %46 : vector<1x128xf32>
    %48 = arith.mulf %42, %47 : vector<1x128xf32>
    %cst_15 = arith.constant 2.000000e+00 : f32
    %49 = vector.broadcast %cst_15 : f32 to vector<1x128xf32>
    %50 = arith.subf %49, %48 : vector<1x128xf32>
    %51 = arith.mulf %47, %50 : vector<1x128xf32>
    %52 = vector.broadcast %51 : vector<1x128xf32> to vector<8x128xf32>
    %53 = arith.mulf %40, %52 : vector<8x128xf32>
    %c0_16 = arith.constant 0 : index
    %c0_17 = arith.constant 0 : index
    %54 = vector.load %arg6[%c0_16, %c0_17] : memref<8x128xf32, #tpu.memory_space<vmem>>, vector<8x128xf32>
    tpu.vector_store %arg6[%c0_16, %c0_17], %53 {strides = array<i32>} : memref<8x128xf32, #tpu.memory_space<vmem>>, vector<8x128xf32>,
    return
  }
  func.func @transform_0(%arg0: i32) -> (i32, i32) {
    %c0_i32 = arith.constant 0 : i32
    %c0_i32_0 = arith.constant 0 : i32
    return %arg0, %c0_i32 : i32, i32
  }
  func.func @transform_1(%arg0: i32) -> (i32, i32) {
    %c0_i32 = arith.constant 0 : i32
    %c0_i32_0 = arith.constant 0 : i32
    return %c0_i32, %arg0 : i32, i32
  }
  func.func @transform_2(%arg0: i32) -> (i32, i32) {
    %c0_i32 = arith.constant 0 : i32
    %c0_i32_0 = arith.constant 0 : i32
    %c0_i32_1 = arith.constant 0 : i32
    return %c0_i32, %c0_i32_0 : i32, i32
  }
  func.func @transform_3(%arg0: i32) -> (i32, i32) {
    %c0_i32 = arith.constant 0 : i32
    %c0_i32_0 = arith.constant 0 : i32
    %c0_i32_1 = arith.constant 0 : i32
    return %c0_i32, %c0_i32_0 : i32, i32
  }
  func.func @transform_4(%arg0: i32) -> (i32, i32) {
    %c0_i32 = arith.constant 0 : i32
    %c0_i32_0 = arith.constant 0 : i32
    %c0_i32_1 = arith.constant 0 : i32
    return %c0_i32, %c0_i32_0 : i32, i32
  }
  func.func @transform_5(%arg0: i32) -> (i32, i32) {
    %c0_i32 = arith.constant 0 : i32
    %c0_i32_0 = arith.constant 0 : i32
    return %c0_i32, %arg0 : i32, i32
  }
}

</mosaic_0001>

<bundles_post_ra>
// kernel: cat_multiclass_forward.1
= control target key start
LH: loop header
LB: loop body
LE: loop exit
PB: predicated region body
PF: predicated region fallthrough
CT: control target
= control target key end

     0   :  { %10 = vsyncpa [#allocation3], 0  ;;  %s470_s18 = smov [#allocation2]   ;;  %s609_s0 = inlined_call_operand.vmem [shape: f32[8,32], index: 0, kind: input, shape index: {}]   ;;  %s610_s1 = inlined_call_operand.hbm [shape: s32[3,8], index: 1, kind: input, shape index: {}]   ;;  %s611_s2 = inlined_call_operand.vmem [shape: f32[8,32], index: 2, kind: input, shape index: {}]   ;;  %s612_s3 = inlined_call_operand.vmem [shape: f32[8,16], index: 3, kind: input, shape index: {}]   ;;  %s613_s4 = inlined_call_operand.vmem [shape: f32[8,1], index: 4, kind: input, shape index: {}]   ;;  %s614_s5 = inlined_call_operand.vmem [shape: f32[8,8], index: 5, kind: output, shape index: {}]  }
   0x1   :  { %s19_s19 = sshll.u32 %s470_s18, 4  ;;  %s446_s22 = scalar_lea.hbm %s610_s1, 64  ;;  %s20_s19 = int_to_ptr.vmem [resolvable:$true] %s19_s19 }
   0x2   :  { %p447_p0 = scmp.ne.s32.totalorder %s610_s1, %s446_s22  ;;  %p450_p1 = scmp.lt.u32.totalorder %s446_s22, %s610_s1 }
   0x4   :  { %p452_p2 = pnand %p450_p1, %p447_p0 }
   0x6   :  { %455 = shalt.err (!%p452_p2)
}
   0x7   :  { %s456_s27 = scalar_lea.vmem %s20_s19, 64  ;;  %p461_p4 = scmp.lt.s32.totalorder %s20_s19, %s20_s19 }
   0x8   :  { %p457_p3 = scmp.ne.s32.totalorder %s20_s19, %s456_s27  ;;  %p462_p5 = scmp.lt.s32.totalorder %s456_s27, %s456_s27 }
   0xa   :  { %p463_p6 = por %p462_p5, %p461_p4 }
   0xc   :  { %p464_p7 = pnand %p463_p6, %p457_p3 }
   0xe   :  { %467 = shalt.err (!%p464_p7)
}
   0xf   :  { %22 = dma.hbm_to_vmem [thread:$0]  %s610_s1, 64, %s20_s19, [#allocation3]  }
  0x10   :  { %468 = dma.done.wait [#allocation3], 64  }
  0x11   :  { %469 = vsyncadd [#allocation3], 4294967232  ;;  %v471_v0 = vmov 0.0|0.0   ;;  %v50_v1 = vlaneseq  ;;  %vm472_vm0 = vmmov 0   ;;  %v473_v2 = vmov 0.0   ;;  %v32_v5 = vld [vmem:[%s609_s0] sm:$0xff] }
  0x12   :  { %404 = vmatprep.subr.bf16.mxu1 %v471_v0  ;;  %401 = vmatprep.subr.bf16.mxu0 %v471_v0  ;;  %v474_v3 = vmov 0   ;;  %vm160_vm1 = vcmask 261120   ;;  %v33_v6 = vld [vmem:[%s609_s0 + $0x8] sm:$0xff]  ;;  %v34_v10 = vld [vmem:[%s609_s0 + $0x10] sm:$0xff]  ;;  %v35_v11 = vld [vmem:[%s609_s0 + $0x18] sm:$0xff]  ;;  %vm86_vm9 = vcmask 130048  }
  0x13   :  { %363 = vmatprep.mubr.msk.f32.mxu0 %vm472_vm0, %v473_v2  ;;  %398 = vmatprep.mubr.msk.f32.mxu1 %vm472_vm0, %v473_v2  ;;  %v51_v4 = vshrl.u32 %v50_v1, 7  ;;  %vm527_vm2 = vmpackc.low %vm160_vm1, %vm160_vm1  ;;  %v405_v8 = vpack.c.bf16 %v33_v6, %v32_v5  ;;  %v48_v15 = vld [vmem:[#allocation2] sm:$0x7]  ;;  %v409_v20 = vpack.c.bf16 %v35_v11, %v34_v10  ;;  %v37_v30 = vld [vmem:[%s609_s0 + $0x28] sm:$0xff] }
  0x14   :  { %441 = vset.pattern.permute.xlu0 %v474_v3  ;;  %v61_v17 = vadd.s32 4, %v48_v15  ;;  %v72_v18 = vadd.s32 9, %v48_v15  ;;  %v282_v19 = vld [vmem:[%s613_s4] sm:$0xff]  ;;  %v38_v39 = vld [vmem:[%s609_s0 + $0x30] sm:$0xff]  ;;  %v39_v40 = vld [vmem:[%s609_s0 + $0x38] sm:$0xff] }
  0x15   :  { %v55_v9 = vsub.s32 0, %v51_v4  ;;  %407 = vmatpush3.bf16.xpose.msk.msra.mxu1 %vm527_vm2, %v405_v8  ;;  %v52_v12 = vadd.s32 8, %v51_v4  ;;  %v64_v13 = vsub.s32 1, %v51_v4  ;;  %v75_v14 = vsub.s32 2, %v51_v4  ;;  %285 = vperm.xlu0 %441, %v282_v19   ;;  %v36_v29 = vld [vmem:[%s609_s0 + $0x20] sm:$0xff]  ;;  %v41_v44 = vld [vmem:[%s609_s0 + $0x48] sm:$0xff] }
  0x16   :  { %408 = vmatprep.subr.bf16.mxu1 %v471_v0  ;;  %v413_v35 = vpack.c.bf16 %v37_v30, %v36_v29  ;;  %v85_v41 = vld [vmem:[%s612_s3] sm:$0xff]  ;;  %v417_v42 = vpack.c.bf16 %v39_v40, %v38_v39  ;;  %v42_v46 = vld [vmem:[%s609_s0 + $0x50] sm:$0xff]  ;;  %v43_v47 = vld [vmem:[%s609_s0 + $0x58] sm:$0xff] }
  0x17   :  { %v56_v16 = vrot.slane %v48_v15, %v55_v9  ;;  %v65_v21 = vrot.slane %v61_v17, %v64_v13  ;;  %v76_v22 = vrot.slane %v72_v18, %v75_v14  ;;  %v40_v43 = vld [vmem:[%s609_s0 + $0x40] sm:$0xff]  ;;  %v425_v48 = vpack.c.bf16 %v43_v47, %v42_v46  ;;  %v45_v50 = vld [vmem:[%s609_s0 + $0x68] sm:$0xff]  ;;  %v46_v52 = vld [vmem:[%s609_s0 + $0x70] sm:$0xff] }
  0x18   :  { %v421_v45 = vpack.c.bf16 %v41_v44, %v40_v43  ;;  %v44_v49 = vld [vmem:[%s609_s0 + $0x60] sm:$0xff]  ;;  %v47_v53 = vld [vmem:[%s609_s0 + $0x78] sm:$0xff] }
  0x19   :  { %vm57_vm3 = vcmp.eq.s32.totalorder %v51_v4, %v56_v16  ;;  %vm58_vm4 = vcmp.eq.s32.totalorder %v52_v12, %v56_v16  ;;  %vm66_vm5 = vcmp.eq.s32.totalorder %v51_v4, %v65_v21  ;;  %vm67_vm6 = vcmp.eq.s32.totalorder %v52_v12, %v65_v21  ;;  %v49_v55 = vld [vmem:[%s611_s2] sm:$0xff] }
  0x1a   :  { %v59_v23 = vsel %vm57_vm3, 1, %v474_v3  ;;  %v60_v24 = vsel %vm58_vm4, 1, %v474_v3  ;;  %vm77_vm7 = vcmp.eq.s32.totalorder %v51_v4, %v76_v22  ;;  %vm78_vm8 = vcmp.eq.s32.totalorder %v52_v12, %v76_v22 }
  0x1b   :  { %v68_v25 = vsel %vm66_vm5, 1, %v474_v3  ;;  %v69_v26 = vsel %vm67_vm6, 1, %v474_v3  ;;  %v79_v27 = vsel %vm77_vm7, 1, %v474_v3  ;;  %v80_v28 = vsel %vm78_vm8, 1, %v474_v3 }
  0x1c   :  { %v70_v31 = vadd.s32 %v68_v25, %v59_v23  ;;  %v71_v32 = vadd.s32 %v69_v26, %v60_v24  ;;  %v429_v51 = vpack.c.bf16 %v45_v50, %v44_v49  ;;  %v433_v54 = vpack.c.bf16 %v47_v53, %v46_v52 }
  0x1d   :  { %411 = vmatpush3.bf16.xpose.msk.msra.mxu1 %vm527_vm2, %v409_v20 }
  0x1e   :  { %412 = vmatprep.subr.bf16.mxu1 %v471_v0  ;;  %v81_v33 = vadd.s32 %v79_v27, %v70_v31  ;;  %v82_v34 = vadd.s32 %v80_v28, %v71_v32 }
  0x20   :  { %v83_v36 = vcvt.s32.f32 %v81_v33  ;;  %v84_v37 = vcvt.s32.f32 %v82_v34 }
  0x22   :  { %v402_v38 = vpack.c.bf16 %v84_v37, %v83_v36 }
  0x24   :  { %403 = vmatpush3.bf16.msra.mxu0 %v402_v38 }
  0x25   :  { %415 = vmatpush3.bf16.xpose.msk.msra.mxu1 %vm527_vm2, %v413_v35 }
  0x26   :  { %416 = vmatprep.subr.bf16.mxu1 %v471_v0 }
  0x27   :  { %364 = vmatmul.mubr.msk.f32.vlgmr.msra.gmra.mrb[0].mxu0 %vm86_vm9, %v85_v41 }
  0x2d   :  { %419 = vmatpush3.bf16.xpose.msk.msra.mxu1 %vm527_vm2, %v417_v42 }
  0x2e   :  { %420 = vmatprep.subr.bf16.mxu1 %v471_v0 }
  0x35   :  { %423 = vmatpush3.bf16.xpose.msk.msra.mxu1 %vm527_vm2, %v421_v45 }
  0x36   :  { %424 = vmatprep.subr.bf16.mxu1 %v471_v0 }
  0x3d   :  { %427 = vmatpush3.bf16.xpose.msk.msra.mxu1 %vm527_vm2, %v425_v48 }
  0x3e   :  { %428 = vmatprep.subr.bf16.mxu1 %v471_v0 }
  0x45   :  { %431 = vmatpush3.bf16.xpose.msk.msra.mxu1 %vm527_vm2, %v429_v51 }
  0x46   :  { %432 = vmatprep.subr.bf16.mxu1 %v471_v0 }
  0x4d   :  { %435 = vmatpush3.bf16.xpose.msk.msra.mxu1 %vm527_vm2, %v433_v54 }
  0x54   :  { %399 = vmatmul.mubr.msk.f32.vlgmr.msra.gmra.mrb[0].mxu1 %vm160_vm1, %v49_v55 }
  0x94   :  { %v286_v59 = vpop.permute.xlu0 %285 }
  0xfa   :  { %v156_v56 = vpop.f32.mrb[0].mxu0 }
  0xfb   :  { %v365_v57 = vpop.f32.mrb[1].mxu0 }
 0x127   :  { %v278_v58 = vpop.f32.mrb[0].mxu1 }
 0x128   :  { %v279_v60 = vadd.f32 %v278_v58, %v156_v56  ;;  %v400_v61 = vpop.f32.mrb[1].mxu1 }
 0x12a   :  { %v288_v62 = vadd.f32 %v286_v59, %v279_v60 }
 0x12c   :  { %v338_v63 = vclamps-f32 %v288_v62, 50.0 }
 0x12e   :  { %v291_v0 = vrot.slane %v338_v63, 4 }
 0x130   :  { %v292_v1 = vmax.f32 %v338_v63, %v291_v0 }
 0x132   :  { %v293_v2 = vrot.slane %v292_v1, 2 }
 0x134   :  { %v294_v3 = vmax.f32 %v292_v1, %v293_v2 }
 0x136   :  { %v295_v4 = vrot.slane %v294_v3, 1 }
 0x138   :  { %v296_v5 = vmax.f32 %v294_v3, %v295_v4 }
 0x13a   :  { %v297_v6 = vsub.f32 %v338_v63, %v296_v5 }
 0x13c   :  { %v298_v7 = vmul.f32 1.442695, %v297_v6 }
 0x13e   :  { %442 = vpow2.f32 %v298_v7 }
 0x148   :  { %v443_v8 = vpop.eup %442 }
 0x149   :  { %v300_v9 = vrot.slane %v443_v8, 4 }
 0x14b   :  { %v301_v10 = vadd.f32 %v443_v8, %v300_v9 }
 0x14d   :  { %v302_v11 = vrot.slane %v301_v10, 2 }
 0x14f   :  { %v303_v12 = vadd.f32 %v302_v11, %v301_v10 }
 0x151   :  { %v304_v13 = vrot.slane %v303_v12, 1 }
 0x153   :  { %v305_v14 = vadd.f32 %v304_v13, %v303_v12 }
 0x155   :  { %444 = vrcp.f32 %v305_v14 }
 0x15f   :  { %v445_v15 = vpop.eup %444 }
 0x160   :  { %v307_v16 = vmul.f32 %v445_v15, %v305_v14 }
 0x162   :  { %v308_v17 = vsub.f32 2.0, %v307_v16 }
 0x164   :  { %v309_v18 = vmul.f32 %v445_v15, %v308_v17 }
 0x166   :  { %v310_v19 = vmul.f32 %v309_v18, %v305_v14 }
 0x168   :  { %v311_v20 = vsub.f32 2.0, %v310_v19 }
 0x16a   :  { %v312_v21 = vmul.f32 %v311_v20, %v309_v18 }
 0x16c   :  { %v313_v22 = vmul.f32 %v443_v8, %v312_v21 }
 0x16e   :  { %314 = vst [vmem:[%s614_s5] sm:$0xff] %v313_v22 }
 0x16f   :  { %319 = vsyncpa [#allocation3], 1 }

</bundles_post_ra>
